<compile_context>
chip_gen: v5e
topology: v5e:2x2
jax: 0.10.0
libtpu: 0.0.40
codegen_flags: <defaults>
</compile_context>

<pallas_src>
import jax
import jax.numpy as jnp
from jax.experimental import pallas as pl
from jax.experimental.pallas import tpu as pltpu


def _round_up(x, m):
    return (x + m - 1) // m * m


# ----------------------------------------------------------------------------
# Fused kernel: one-hot embed -> shared encoder (Linear+ReLU) -> head matmul.
# Token ids are tiled over rows; all parameters stay VMEM-resident (constant
# index_map).  Matmul inputs are bf16, accumulation + epilogue are f32.
# ----------------------------------------------------------------------------
def _parser_kernel(tok_ref, emb_ref, wenc_ref, benc_ref, wdec_ref, bdec_ref,
                   out_ref):
    ids = tok_ref[...]                                        # [TN, 1] int32
    tn = ids.shape[0]
    vsrc = emb_ref.shape[0]

    # In-kernel embedding gather: one-hot [TN, Vsrc] @ embed [Vsrc, Hp] on MXU.
    onehot = (ids == jax.lax.broadcasted_iota(jnp.int32, (tn, vsrc), 1)
              ).astype(emb_ref.dtype)
    x = jnp.dot(onehot, emb_ref[...],
                preferred_element_type=jnp.float32)           # [TN, Hp] f32

    # Shared encoder: bf16 matmul inputs, f32 accumulate, f32 epilogue.
    h = jnp.dot(x.astype(wenc_ref.dtype), wenc_ref[...],
                preferred_element_type=jnp.float32)
    h = jnp.maximum(h + benc_ref[...], 0.0)                   # (1,Hp) broadcasts

    # Task head(s): w_dec is either a single head or both heads concatenated
    # along the lane axis (lane-dense output).
    logits = jnp.dot(h.astype(wdec_ref.dtype), wdec_ref[...],
                     preferred_element_type=jnp.float32)
    out_ref[...] = logits + bdec_ref[...]


def _fused_forward(tok_2d, emb, w_enc, b_enc, w_dec, b_dec, *, block_rows=256):
    """tok_2d: [N, 1] int32 token ids; returns logits [N, V] f32."""
    n = tok_2d.shape[0]
    vsrc, hp = emb.shape
    v = w_dec.shape[1]

    tn = min(block_rows, _round_up(n, 8))
    n_pad = _round_up(n, tn)
    if n_pad != n:
        tok_2d = jnp.pad(tok_2d, ((0, n_pad - n), (0, 0)))
    grid = (n_pad // tn,)

    cost = pl.CostEstimate(
        flops=2 * n_pad * (vsrc * hp + hp * hp + hp * v),
        transcendentals=0,
        bytes_accessed=(tok_2d.size * 4 + emb.size * 2 + w_enc.size * 2
                        + b_enc.size * 4 + w_dec.size * 2 + b_dec.size * 4
                        + n_pad * v * 4),
    )

    out = pl.pallas_call(
        _parser_kernel,
        out_shape=jax.ShapeDtypeStruct((n_pad, v), jnp.float32),
        grid_spec=pl.GridSpec(
            grid=grid,
            in_specs=[
                pl.BlockSpec((tn, 1), lambda i: (i, 0)),      # token ids (tiled)
                pl.BlockSpec((vsrc, hp), lambda i: (0, 0)),   # resident params
                pl.BlockSpec((hp, hp), lambda i: (0, 0)),
                pl.BlockSpec((1, hp), lambda i: (0, 0)),
                pl.BlockSpec((hp, v), lambda i: (0, 0)),
                pl.BlockSpec((1, v), lambda i: (0, 0)),
            ],
            out_specs=pl.BlockSpec((tn, v), lambda i: (i, 0)),
        ),
        compiler_params=pltpu.CompilerParams(
            dimension_semantics=("parallel",)),
        cost_estimate=cost,
    )(tok_2d, emb, w_enc, b_enc, w_dec, b_dec)
    return out[:n]


# ----------------------------------------------------------------------------
# Multitask wrapper (parameter sharing mirrors the PyTorch module: the dae
# branch reuses src_embed and the encoder of the sp branch).
# ----------------------------------------------------------------------------
class MultitaskSemanticParser:

    def __init__(self, key, vocab_src=128, vocab_sp=256, hidden=32,
                 hidden_pad=128):
        ks = jax.random.split(key, 7)
        self.vocab_src, self.vocab_sp = vocab_src, vocab_sp
        self.hidden, self.hidden_pad = hidden, hidden_pad
        hp = hidden_pad

        # logical (unpadded) f32 parameters
        src_embed = jax.random.normal(ks[0], (vocab_src, hidden), jnp.float32) * 0.02
        w_enc = jax.random.normal(ks[1], (hidden, hidden), jnp.float32) * 0.1
        b_enc = jax.random.normal(ks[2], (hidden,), jnp.float32) * 0.01
        w_sp = jax.random.normal(ks[3], (hidden, vocab_sp), jnp.float32) * 0.1
        b_sp = jax.random.normal(ks[4], (vocab_sp,), jnp.float32) * 0.01
        w_dae = jax.random.normal(ks[5], (hidden, vocab_src), jnp.float32) * 0.1
        b_dae = jax.random.normal(ks[6], (vocab_src,), jnp.float32) * 0.01

        # Zero-pad hidden (32 -> 128) once at init so the MXU contraction is
        # full-width; matmul operands stored in bf16, biases in f32.
        self.emb = jnp.zeros((vocab_src, hp), jnp.bfloat16).at[:, :hidden].set(
            src_embed.astype(jnp.bfloat16))                   # shared src_embed
        self.w_enc = jnp.zeros((hp, hp), jnp.bfloat16).at[:hidden, :hidden].set(
            w_enc.astype(jnp.bfloat16))                       # shared encoder
        self.b_enc = jnp.zeros((1, hp), jnp.float32).at[:, :hidden].set(b_enc[None, :])
        self.w_sp = jnp.zeros((hp, vocab_sp), jnp.bfloat16).at[:hidden, :].set(
            w_sp.astype(jnp.bfloat16))
        self.b_sp = b_sp[None, :].astype(jnp.float32)
        self.w_dae = jnp.zeros((hp, vocab_src), jnp.bfloat16).at[:hidden, :].set(
            w_dae.astype(jnp.bfloat16))
        self.b_dae = b_dae[None, :].astype(jnp.float32)

        # Both heads concatenated along the lane axis (256 + 128 = 384).
        self.w_both = jnp.concatenate([self.w_sp, self.w_dae], axis=1)
        self.b_both = jnp.concatenate([self.b_sp, self.b_dae], axis=1)

    def _run(self, tokens, w_dec, b_dec):
        b, s = tokens.shape
        tok = tokens.reshape(b * s, 1).astype(jnp.int32)
        logits = _fused_forward(tok, self.emb, self.w_enc, self.b_enc, w_dec, b_dec)
        return logits.reshape(b, s, -1)

    def forward(self, tokens, task="semantic_parsing"):
        # mirrors the PyTorch task dispatch
        if task == "semantic_parsing":
            return self._run(tokens, self.w_sp, self.b_sp)
        else:
            return self._run(tokens, self.w_dae, self.b_dae)

    def forward_multitask(self, tokens):
        """Both heads in a single kernel call (shared encoder runs once)."""
        both = self._run(tokens, self.w_both, self.b_both)
        return both[..., :self.vocab_sp], both[..., self.vocab_sp:]

    # TODO(synk): decode_batch (autoregressive beam/greedy decoding) has no
    # clean single-kernel Pallas equivalent; only the forward hot path is done.
    __call__ = forward


def _reference_logits(model, tokens, w_dec, b_dec):
    """Plain-JAX reference mirroring the kernel's bf16/f32 cast sequence."""
    n = tokens.size
    ids = tokens.reshape(n, 1).astype(jnp.int32)
    onehot = (ids == jnp.arange(model.vocab_src, dtype=jnp.int32)[None, :]
              ).astype(jnp.bfloat16)
    x = jnp.dot(onehot, model.emb, preferred_element_type=jnp.float32)
    h = jnp.dot(x.astype(jnp.bfloat16), model.w_enc,
                preferred_element_type=jnp.float32)
    h = jnp.maximum(h + model.b_enc, 0.0)
    logits = jnp.dot(h.astype(jnp.bfloat16), w_dec,
                     preferred_element_type=jnp.float32) + b_dec
    return logits.reshape(tokens.shape + (-1,))


if __name__ == "__main__":
    key = jax.random.PRNGKey(0)
    model_key, data_key = jax.random.split(key)

    B, S = 2, 8
    vocab_src, vocab_sp, hidden = 128, 256, 32

    model = MultitaskSemanticParser(model_key, vocab_src, vocab_sp, hidden)
    tokens = jax.random.randint(data_key, (B, S), 0, vocab_src, dtype=jnp.int32)

    # Fused multitask path: ONE pallas_call runs the shared encoder once and
    # produces logits for both heads.
    sp_logits, dae_logits = model.forward_multitask(tokens)
    jax.block_until_ready((sp_logits, dae_logits))
    assert sp_logits.shape == (B, S, vocab_sp)
    assert dae_logits.shape == (B, S, vocab_src)

    # Per-task dispatch path (mirrors PyTorch forward(task=...)).
    sp_only = model(tokens, task="semantic_parsing")
    dae_only = model(tokens, task="dae")
    jax.block_until_ready((sp_only, dae_only))

    # Correctness vs plain-JAX reference.
    ref_sp = _reference_logits(model, tokens, model.w_sp, model.b_sp)
    ref_dae = _reference_logits(model, tokens, model.w_dae, model.b_dae)
    assert jnp.allclose(sp_logits, ref_sp, atol=1e-3, rtol=1e-3), "sp mismatch"
    assert jnp.allclose(dae_logits, ref_dae, atol=1e-3, rtol=1e-3), "dae mismatch"
    assert jnp.allclose(sp_only, sp_logits, atol=1e-4), "dispatch sp mismatch"
    assert jnp.allclose(dae_only, dae_logits, atol=1e-4), "dispatch dae mismatch"

    print("KERNEL_OK")
</pallas_src>

<mosaic_0001>
module attributes {stable_mosaic.version = 11 : i64} {
  func.func @_parser_kernel(%arg0: i32, %arg1: memref<16x1xi32, #tpu.memory_space<vmem>>, %arg2: memref<128x128xbf16, #tpu.memory_space<vmem>>, %arg3: memref<128x128xbf16, #tpu.memory_space<vmem>>, %arg4: memref<1x128xf32, #tpu.memory_space<vmem>>, %arg5: memref<128x384xbf16, #tpu.memory_space<vmem>>, %arg6: memref<1x384xf32, #tpu.memory_space<vmem>>, %arg7: memref<16x384xf32, #tpu.memory_space<vmem>>) attributes {dimension_semantics = [#tpu.dimension_semantics<parallel>], iteration_bounds = array<i64: 1>, scalar_prefetch = 0 : i64, scratch_operands = 0 : i64, tpu.core_type = #tpu.core_type<tc>, window_params = [{transform_indices = @transform_0, window_bounds = array<i64: 16, 1>}, {pipeline_mode = #tpu.pipeline_mode<synchronous>, transform_indices = @transform_1, window_bounds = array<i64: 128, 128>}, {pipeline_mode = #tpu.pipeline_mode<synchronous>, transform_indices = @transform_2, window_bounds = array<i64: 128, 128>}, {pipeline_mode = #tpu.pipeline_mode<synchronous>, transform_indices = @transform_3, window_bounds = array<i64: 1, 128>}, {pipeline_mode = #tpu.pipeline_mode<synchronous>, transform_indices = @transform_4, window_bounds = array<i64: 128, 384>}, {pipeline_mode = #tpu.pipeline_mode<synchronous>, transform_indices = @transform_5, window_bounds = array<i64: 1, 384>}, {transform_indices = @transform_6, window_bounds = array<i64: 16, 384>}]} {
    %c0 = arith.constant 0 : index
    %c0_0 = arith.constant 0 : index
    %0 = vector.load %arg1[%c0, %c0_0] : memref<16x1xi32, #tpu.memory_space<vmem>>, vector<16x1xi32>
    %1 = tpu.iota {dimensions = array<i32: 1>} : vector<16x128xi32>
    %2 = vector.broadcast %0 : vector<16x1xi32> to vector<16x128xi32>
    %3 = arith.cmpi eq, %2, %1 : vector<16x128xi32>
    %4 = arith.extui %3 : vector<16x128xi1> to vector<16x128xi32>
    %5 = arith.sitofp %4 : vector<16x128xi32> to vector<16x128xf32>
    %6 = arith.truncf %5 : vector<16x128xf32> to vector<16x128xbf16>
    %c0_1 = arith.constant 0 : index
    %c0_2 = arith.constant 0 : index
    %7 = vector.load %arg2[%c0_1, %c0_2] : memref<128x128xbf16, #tpu.memory_space<vmem>>, vector<128x128xbf16>
    %cst = arith.constant dense<0.000000e+00> : vector<16x128xf32>
    %8 = tpu.matmul %6, %7, %cst {dimension_numbers = #tpu.dot_dimension_numbers<[1], [0], [0], [1], [0, 0, 1, 1], [], []>} : vector<16x128xbf16>, vector<128x128xbf16>, vector<16x128xf32> -> vector<16x128xf32>
    %9 = arith.truncf %8 : vector<16x128xf32> to vector<16x128xbf16>
    %c0_3 = arith.constant 0 : index
    %c0_4 = arith.constant 0 : index
    %10 = vector.load %arg3[%c0_3, %c0_4] : memref<128x128xbf16, #tpu.memory_space<vmem>>, vector<128x128xbf16>
    %cst_5 = arith.constant dense<0.000000e+00> : vector<16x128xf32>
    %11 = tpu.matmul %9, %10, %cst_5 {dimension_numbers = #tpu.dot_dimension_numbers<[1], [0], [0], [1], [0, 0, 1, 1], [], []>} : vector<16x128xbf16>, vector<128x128xbf16>, vector<16x128xf32> -> vector<16x128xf32>
    %c0_6 = arith.constant 0 : index
    %c0_7 = arith.constant 0 : index
    %12 = vector.load %arg4[%c0_6, %c0_7] : memref<1x128xf32, #tpu.memory_space<vmem>>, vector<1x128xf32>
    %13 = vector.broadcast %12 : vector<1x128xf32> to vector<16x128xf32>
    %14 = arith.addf %11, %13 : vector<16x128xf32>
    %cst_8 = arith.constant 0.000000e+00 : f32
    %15 = vector.broadcast %cst_8 : f32 to vector<16x128xf32>
    %16 = arith.maximumf %14, %15 : vector<16x128xf32>
    %17 = arith.truncf %16 : vector<16x128xf32> to vector<16x128xbf16>
    %c0_9 = arith.constant 0 : index
    %c0_10 = arith.constant 0 : index
    %18 = vector.load %arg5[%c0_9, %c0_10] : memref<128x384xbf16, #tpu.memory_space<vmem>>, vector<128x384xbf16>
    %cst_11 = arith.constant dense<0.000000e+00> : vector<16x384xf32>
    %19 = tpu.matmul %17, %18, %cst_11 {dimension_numbers = #tpu.dot_dimension_numbers<[1], [0], [0], [1], [0, 0, 1, 1], [], []>} : vector<16x128xbf16>, vector<128x384xbf16>, vector<16x384xf32> -> vector<16x384xf32>
    %c0_12 = arith.constant 0 : index
    %c0_13 = arith.constant 0 : index
    %20 = vector.load %arg6[%c0_12, %c0_13] : memref<1x384xf32, #tpu.memory_space<vmem>>, vector<1x384xf32>
    %21 = vector.broadcast %20 : vector<1x384xf32> to vector<16x384xf32>
    %22 = arith.addf %19, %21 : vector<16x384xf32>
    %c0_14 = arith.constant 0 : index
    %c0_15 = arith.constant 0 : index
    %23 = vector.load %arg7[%c0_14, %c0_15] : memref<16x384xf32, #tpu.memory_space<vmem>>, vector<16x384xf32>
    tpu.vector_store %arg7[%c0_14, %c0_15], %22 {strides = array<i32>} : memref<16x384xf32, #tpu.memory_space<vmem>>, vector<16x384xf32>,
    return
  }
  func.func @transform_0(%arg0: i32) -> (i32, i32) {
    %c0_i32 = arith.constant 0 : i32
    %c0_i32_0 = arith.constant 0 : i32
    return %arg0, %c0_i32 : i32, i32
  }
  func.func @transform_1(%arg0: i32) -> (i32, i32) {
    %c0_i32 = arith.constant 0 : i32
    %c0_i32_0 = arith.constant 0 : i32
    %c0_i32_1 = arith.constant 0 : i32
    return %c0_i32, %c0_i32_0 : i32, i32
  }
  func.func @transform_2(%arg0: i32) -> (i32, i32) {
    %c0_i32 = arith.constant 0 : i32
    %c0_i32_0 = arith.constant 0 : i32
    %c0_i32_1 = arith.constant 0 : i32
    return %c0_i32, %c0_i32_0 : i32, i32
  }
  func.func @transform_3(%arg0: i32) -> (i32, i32) {
    %c0_i32 = arith.constant 0 : i32
    %c0_i32_0 = arith.constant 0 : i32
    %c0_i32_1 = arith.constant 0 : i32
    return %c0_i32, %c0_i32_0 : i32, i32
  }
  func.func @transform_4(%arg0: i32) -> (i32, i32) {
    %c0_i32 = arith.constant 0 : i32
    %c0_i32_0 = arith.constant 0 : i32
    %c0_i32_1 = arith.constant 0 : i32
    return %c0_i32, %c0_i32_0 : i32, i32
  }
  func.func @transform_5(%arg0: i32) -> (i32, i32) {
    %c0_i32 = arith.constant 0 : i32
    %c0_i32_0 = arith.constant 0 : i32
    %c0_i32_1 = arith.constant 0 : i32
    return %c0_i32, %c0_i32_0 : i32, i32
  }
  func.func @transform_6(%arg0: i32) -> (i32, i32) {
    %c0_i32 = arith.constant 0 : i32
    %c0_i32_0 = arith.constant 0 : i32
    return %arg0, %c0_i32 : i32, i32
  }
}

</mosaic_0001>

<bundles_post_ra>
// kernel: tpu_custom_call.1
= control target key start
LH: loop header
LB: loop body
LE: loop exit
PB: predicated region body
PF: predicated region fallthrough
CT: control target
= control target key end

     0   :  { %11 = vsyncpa [#allocation3], 0  ;;  %s879_s0 = inlined_call_operand.vmem [shape: s32[16,1], index: 0, kind: input, shape index: {}]   ;;  %s880_s1 = inlined_call_operand.hbm [shape: bf16[128,128], index: 1, kind: input, shape index: {}]   ;;  %s881_s2 = inlined_call_operand.hbm [shape: bf16[128,128], index: 2, kind: input, shape index: {}]   ;;  %s882_s3 = inlined_call_operand.vmem [shape: f32[1,128], index: 3, kind: input, shape index: {}]   ;;  %s883_s4 = inlined_call_operand.hbm [shape: bf16[128,384], index: 4, kind: input, shape index: {}]   ;;  %s884_s5 = inlined_call_operand.vmem [shape: f32[1,384], index: 5, kind: input, shape index: {}]   ;;  %s885_s6 = inlined_call_operand.hbm [shape: f32[16,384], index: 6, kind: output, shape index: {}]  }
   0x1   :  { %12 = vsyncpa [#allocation6], 0 }
   0x2   :  { %13 = vsyncpa [#allocation4], 0  ;;  %s33_s23 = sshll.u32 %s881_s2, 4  ;;  %s808_s24 = smov [#allocation5]   ;;  %s34_s23 = int_to_ptr.hbm [resolvable:$true] %s33_s23 }
   0x3   :  { %s35_s25 = sshll.u32 %s808_s24, 4  ;;  %s20_s28 = sshll.u32 %s880_s1, 4  ;;  %s36_s25 = int_to_ptr.vmem [resolvable:$true] %s35_s25  ;;  %s21_s28 = int_to_ptr.hbm [resolvable:$true] %s20_s28 }
   0x4   :  { %s809_s29 = smov 64   ;;  %s810_s30 = smov 4  }
   0x5   :  { %41 = dma.hbm_to_vmem [thread:$0]  %s34_s23, 1024, %s36_s25, [#allocation6], %s809_s29, %s809_s29, %s810_s30  }
   0x6   :  { %s811_s7 = smov [#allocation2]   ;;  %s48_s11 = sshll.u32 %s883_s4, 4  ;;  %s49_s11 = int_to_ptr.hbm [resolvable:$true] %s48_s11 }
   0x7   :  { %s22_s8 = sshll.u32 %s811_s7, 4  ;;  %s812_s2 = smov [#allocation7]   ;;  %s23_s8 = int_to_ptr.vmem [resolvable:$true] %s22_s8 }
   0x8   :  { %28 = dma.hbm_to_vmem [thread:$0]  %s21_s28, 1024, %s23_s8, [#allocation3], %s809_s29, %s809_s29, %s810_s30  }
   0x9   :  { %s50_s12 = sshll.u32 %s812_s2, 4  ;;  %s813_s13 = smov 192   ;;  %s51_s12 = int_to_ptr.vmem [resolvable:$true] %s50_s12 }
   0xa   :  { %s814_s14 = smov 12  }
   0xb   :  { %56 = dma.hbm_to_vmem [thread:$0]  %s49_s11, 3072, %s51_s12, [#allocation6], %s813_s13, %s813_s13, %s814_s14  }
   0xc   :  { %802 = dma.done.wait [#allocation3], 1024  }
   0xd   :  { %803 = vsyncadd [#allocation3], 4294966272 }
   0xe   :  { %804 = dma.done.wait [#allocation6], 4096  }
   0xf   :  { %805 = vsyncadd [#allocation6], 4294963200  ;;  %v815_v0 = vmov 0   ;;  %v71_v1 = vld [vmem:[%s879_s0] sm:$0xff]  ;;  %v659_v2 = vld [vmem:[#allocation2 + $0x38] sm:$0xff]  ;;  %v73_v17 = vlaneseq  ;;  %s818_s23 = smov 384  }
  0x10   :  { %704 = vset.pattern.permute.xlu0 %v815_v0  ;;  %152 = vmatpush.bf16.msra.mxu0 %v659_v2  ;;  %v658_v3 = vld [vmem:[#allocation2 + $0x30] sm:$0xff]  ;;  %v72_v4 = vld [vmem:[%s879_s0 + $0x8] sm:$0xff]  ;;  %v656_v6 = vld [vmem:[#allocation2 + $0x20] sm:$0xff]  ;;  %v816_v20 = vmov 1.0|1.0   ;;  %s819_s24 = smov 24  }
  0x11   :  { %76 = vperm.xlu0 %704, %v71_v1   ;;  %v657_v5 = vld [vmem:[#allocation2 + $0x28] sm:$0xff]  ;;  %v655_v7 = vld [vmem:[#allocation2 + $0x18] sm:$0xff]  ;;  %v654_v8 = vld [vmem:[#allocation2 + $0x10] sm:$0xff]  ;;  %v74_v18 = vand.u32 127, %v73_v17 }
  0x12   :  { %v653_v9 = vld [vmem:[#allocation2 + $0x8] sm:$0xff]  ;;  %v652_v10 = vld [vmem:[#allocation2] sm:$0xff]  ;;  %v667_v11 = vld [vmem:[#allocation5 + $0x38] sm:$0xff] }
  0x13   :  { %235 = vmatpush.bf16.msra.mxu1 %v667_v11  ;;  %v666_v12 = vld [vmem:[#allocation5 + $0x30] sm:$0xff]  ;;  %v665_v13 = vld [vmem:[#allocation5 + $0x28] sm:$0xff]  ;;  %v664_v14 = vld [vmem:[#allocation5 + $0x20] sm:$0xff] }
  0x14   :  { %153 = vmatpush.bf16.msra.mxu0 %v658_v3  ;;  %v663_v15 = vld [vmem:[#allocation5 + $0x18] sm:$0xff]  ;;  %v662_v21 = vld [vmem:[#allocation5 + $0x10] sm:$0xff]  ;;  %v661_v22 = vld [vmem:[#allocation5 + $0x8] sm:$0xff] }
  0x15   :  { %v660_v23 = vld [vmem:[#allocation5] sm:$0xff]  ;;  %v642_v24 = vld [vmem:[#allocation7 + $0xa8] sm:$0xf]  ;;  %v690_v25 = vld [vmem:[#allocation7 + $0xb0] sm:$0xf0] }
  0x16   :  { %v689_v26 = vld [vmem:[#allocation7 + $0xac] sm:$0xf]  ;;  %v643_v27 = vor.u32 %v690_v25, %v642_v24  ;;  %v644_v28 = vld [vmem:[#allocation7 + $0xb4] sm:$0xf0]  ;;  %v650_v29 = vld [vmem:[#allocation7 + $0xb0] sm:$0xf] }
  0x17   :  { %236 = vmatpush.bf16.msra.mxu1 %v666_v12  ;;  %v691_v30 = vld [vmem:[#allocation7 + $0xb8] sm:$0xf0]  ;;  %v647_v31 = vor.u32 %v689_v26, %v644_v28  ;;  %v630_v33 = vld [vmem:[#allocation7 + $0x90] sm:$0xf]  ;;  %v686_v35 = vld [vmem:[#allocation7 + $0x94] sm:$0xf] }
  0x18   :  { %154 = vmatpush.bf16.msra.mxu0 %v657_v5  ;;  %v651_v32 = vor.u32 %v691_v30, %v650_v29  ;;  %v687_v34 = vld [vmem:[#allocation7 + $0x98] sm:$0xf0]  ;;  %420 = vmatpush.bf16.msra.mxu2 %v643_v27  ;;  %v632_v37 = vld [vmem:[#allocation7 + $0x9c] sm:$0xf0]  ;;  %v638_v38 = vld [vmem:[#allocation7 + $0x98] sm:$0xf] }
  0x19   :  { %79 = vperm.xlu0 %704, %v72_v4   ;;  %v631_v36 = vor.u32 %v687_v34, %v630_v33  ;;  %v688_v39 = vld [vmem:[#allocation7 + $0xa0] sm:$0xf0]  ;;  %434 = vmatpush.bf16.msra.mxu3 %v647_v31  ;;  %v635_v40 = vor.u32 %v686_v35, %v632_v37  ;;  %v618_v42 = vld [vmem:[#allocation7 + $0x78] sm:$0xf]  ;;  %v683_v44 = vld [vmem:[#allocation7 + $0x7c] sm:$0xf] }
  0x1a   :  { %v639_v41 = vor.u32 %v688_v39, %v638_v38  ;;  %v684_v43 = vld [vmem:[#allocation7 + $0x80] sm:$0xf0]  ;;  %v620_v45 = vld [vmem:[#allocation7 + $0x84] sm:$0xf0]  ;;  %v626_v46 = vld [vmem:[#allocation7 + $0x80] sm:$0xf] }
  0x1b   :  { %237 = vmatpush.bf16.msra.mxu1 %v665_v13  ;;  %v685_v47 = vld [vmem:[#allocation7 + $0x88] sm:$0xf0]  ;;  %v619_v48 = vor.u32 %v684_v43, %v618_v42  ;;  %v623_v49 = vor.u32 %v683_v44, %v620_v45  ;;  %v606_v51 = vld [vmem:[#allocation7 + $0x60] sm:$0xf]  ;;  %v680_v53 = vld [vmem:[#allocation7 + $0x64] sm:$0xf] }
  0x1c   :  { %155 = vmatpush.bf16.msra.mxu0 %v656_v6  ;;  %421 = vmatpush.bf16.msra.mxu2 %v631_v36  ;;  %v627_v50 = vor.u32 %v685_v47, %v626_v46  ;;  %v681_v52 = vld [vmem:[#allocation7 + $0x68] sm:$0xf0]  ;;  %v608_v54 = vld [vmem:[#allocation7 + $0x6c] sm:$0xf0]  ;;  %v614_v55 = vld [vmem:[#allocation7 + $0x68] sm:$0xf] }
  0x1d   :  { %435 = vmatpush.bf16.msra.mxu3 %v635_v40  ;;  %v682_v56 = vld [vmem:[#allocation7 + $0x70] sm:$0xf0]  ;;  %v607_v57 = vor.u32 %v681_v52, %v606_v51  ;;  %v611_v58 = vor.u32 %v680_v53, %v608_v54  ;;  %v594_v63 = vld [vmem:[#allocation7 + $0x48] sm:$0xf]  ;;  %v677_v1 = vld [vmem:[#allocation7 + $0x4c] sm:$0xf] }
  0x1e   :  { %v615_v59 = vor.u32 %v682_v56, %v614_v55  ;;  %v678_v0 = vld [vmem:[#allocation7 + $0x50] sm:$0xf0]  ;;  %v596_v3 = vld [vmem:[#allocation7 + $0x54] sm:$0xf0]  ;;  %v602_v4 = vld [vmem:[#allocation7 + $0x50] sm:$0xf] }
  0x1f   :  { %238 = vmatpush.bf16.msra.mxu1 %v664_v14  ;;  %v595_v2 = vor.u32 %v678_v0, %v594_v63  ;;  %v679_v5 = vld [vmem:[#allocation7 + $0x58] sm:$0xf0]  ;;  %v599_v6 = vor.u32 %v677_v1, %v596_v3  ;;  %v584_v12 = vld [vmem:[#allocation7 + $0x3c] sm:$0xf0]  ;;  %v590_v13 = vld [vmem:[#allocation7 + $0x38] sm:$0xf] }
  0x20   :  { %156 = vmatpush.bf16.msra.mxu0 %v655_v7  ;;  %422 = vmatpush.bf16.msra.mxu2 %v619_v48  ;;  %v603_v7 = vor.u32 %v679_v5, %v602_v4  ;;  %v676_v14 = vld [vmem:[#allocation7 + $0x40] sm:$0xf0]  ;;  %v570_v17 = vld [vmem:[#allocation7 + $0x18] sm:$0xf]  ;;  %v558_v26 = vld [vmem:[#allocation7] sm:$0xf] }
  0x21   :  { %436 = vmatpush.bf16.msra.mxu3 %v623_v49  ;;  %v669_v27 = vld [vmem:[#allocation7 + $0x8] sm:$0xf0]  ;;  %v668_v28 = vld [vmem:[#allocation7 + $0x4] sm:$0xf]  ;;  %v560_v30 = vld [vmem:[#allocation7 + $0xc] sm:$0xf0] }
  0x22   :  { %v559_v29 = vor.u32 %v669_v27, %v558_v26  ;;  %v566_v31 = vld [vmem:[#allocation7 + $0x8] sm:$0xf]  ;;  %v563_v33 = vor.u32 %v668_v28, %v560_v30  ;;  %v705_v36 = vld [vmem:[%s882_s3] ss:$0 sm:$0xff]  ;;  %s817_s3 = smov [#allocation8]  }
  0x23   :  { %239 = vmatpush.bf16.msra.mxu1 %v663_v15  ;;  %v284_v43 = vld [vmem:[%s884_s5] sm:$0x7]  ;;  %s472_s20 = sshll.u32 %s817_s3, 4  ;;  %s474_s5 = sshll.u32 %s885_s6, 4  ;;  %s473_s20 = int_to_ptr.vmem [resolvable:$true] %s472_s20  ;;  %s475_s5 = int_to_ptr.hbm [resolvable:$true] %s474_s5 }
  0x24   :  { %157 = vmatpush.bf16.msra.mxu0 %v654_v8  ;;  %423 = vmatpush.bf16.msra.mxu2 %v607_v57  ;;  %v582_v8 = vld [vmem:[#allocation7 + $0x30] sm:$0xf]  ;;  %v288_v44 = vperm.slane %v284_v43, 2  ;;  %v286_v47 = vperm.slane %v284_v43, 0  ;;  %v287_v48 = vperm.slane %v284_v43, 1 }
  0x25   :  { %437 = vmatpush.bf16.msra.mxu3 %v611_v58 }
  0x27   :  { %240 = vmatpush.bf16.msra.mxu1 %v662_v21  ;;  %v572_v21 = vld [vmem:[#allocation7 + $0x24] sm:$0xf0] }
  0x28   :  { %158 = vmatpush.bf16.msra.mxu0 %v653_v9  ;;  %424 = vmatpush.bf16.msra.mxu2 %v595_v2  ;;  %v675_v9 = vld [vmem:[#allocation7 + $0x38] sm:$0xf0] }
  0x29   :  { %438 = vmatpush.bf16.msra.mxu3 %v599_v6  ;;  %v583_v11 = vor.u32 %v675_v9, %v582_v8 }
  0x2b   :  { %241 = vmatpush.bf16.msra.mxu1 %v661_v22  ;;  %v578_v22 = vld [vmem:[#allocation7 + $0x20] sm:$0xf] }
  0x2c   :  { %159 = vmatpush.bf16.msra.mxu0 %v652_v10  ;;  %v674_v10 = vld [vmem:[#allocation7 + $0x34] sm:$0xf]  ;;  %425 = vmatpush.bf16.msra.mxu2 %v583_v11 }
  0x2d   :  { %v587_v15 = vor.u32 %v674_v10, %v584_v12 }
  0x2f   :  { %242 = vmatpush.bf16.msra.mxu1 %v660_v23  ;;  %439 = vmatpush.bf16.msra.mxu3 %v587_v15  ;;  %v673_v23 = vld [vmem:[#allocation7 + $0x28] sm:$0xf0] }
  0x30   :  { %448 = vmatpush.bf16.msrb.mxu0 %v651_v32  ;;  %v579_v25 = vor.u32 %v673_v23, %v578_v22  ;;  %v670_v32 = vld [vmem:[#allocation7 + $0x10] sm:$0xf0] }
  0x31   :  { %v567_v34 = vor.u32 %v670_v32, %v566_v31 }
  0x34   :  { %449 = vmatpush.bf16.msrb.mxu0 %v639_v41 }
  0x38   :  { %450 = vmatpush.bf16.msrb.mxu0 %v627_v50 }
  0x3c   :  { %451 = vmatpush.bf16.msrb.mxu0 %v615_v59 }
  0x40   :  { %452 = vmatpush.bf16.msrb.mxu0 %v603_v7 }
  0x83   :  { %v77_v16 = vpop.permute.xlu0 %76 }
  0x84   :  { %vm81_vm0 = vcmp.eq.s32.totalorder %v77_v16, %v74_v18  ;;  %v591_v16 = vor.u32 %v676_v14, %v590_v13 }
  0x86   :  { %453 = vmatpush.bf16.msrb.mxu0 %v591_v16 }
  0x8a   :  { %454 = vmatpush.bf16.msrb.mxu0 %v579_v25 }
  0x8b   :  { %v80_v19 = vpop.permute.xlu0 %79 }
  0x8c   :  { %vm82_vm1 = vcmp.eq.s32.totalorder %v80_v19, %v74_v18  ;;  %v672_v18 = vld [vmem:[#allocation7 + $0x20] sm:$0xf0]  ;;  %v671_v19 = vld [vmem:[#allocation7 + $0x1c] sm:$0xf] }
  0x8d   :  { %vm522_vm2 = vmpackc.low %vm82_vm1, %vm81_vm0  ;;  %v575_v24 = vor.u32 %v671_v19, %v572_v21 }
  0x8e   :  { %523 = vmatmul.msk.bf16.vlgmr.msra.gmra.mxu0 %vm522_vm2, %v816_v20  ;;  %v571_v20 = vor.u32 %v672_v18, %v570_v17 }
  0x8f   :  { %440 = vmatpush.bf16.msra.mxu3 %v575_v24  ;;  %455 = vmatpush.bf16.msrb.mxu0 %v567_v34 }
  0x90   :  { %426 = vmatpush.bf16.msra.mxu2 %v571_v20 }
  0x93   :  { %441 = vmatpush.bf16.msra.mxu3 %v563_v33 }
  0x94   :  { %427 = vmatpush.bf16.msra.mxu2 %v559_v29 }
 0x10b   :  { %v161_v60 = vpop.f32.mrf.mxu0 }
 0x113   :  { %v163_v61 = vpop.f32.mrf.mxu0 }
 0x114   :  { %v166_v62 = vpack.c.bf16 %v163_v61, %v161_v60 }
 0x116   :  { %243 = vmatmul.bf16.vlgmr.msra.gmra.mxu1 %v166_v62 }
 0x193   :  { %v244_v35 = vpop.f32.mrf.mxu1 }
 0x194   :  { %v245_v37 = vadd.f32 %v705_v36, %v244_v35 }
 0x196   :  { %v249_v40 = vmax.f32 %v245_v37, 0.0 }
 0x19b   :  { %v246_v38 = vpop.f32.mrf.mxu1 }
 0x19c   :  { %v247_v39 = vadd.f32 %v705_v36, %v246_v38 }
 0x19e   :  { %v250_v41 = vmax.f32 %v247_v39, 0.0 }
 0x1a0   :  { %v251_v42 = vpack.c.bf16 %v250_v41, %v249_v40 }
 0x1a2   :  { %428 = vmatmul.bf16.vlgmr.msra.gmra.mxu2 %v251_v42  ;;  %442 = vmatmul.bf16.vlgmr.msra.gmra.mxu3 %v251_v42 }
 0x1a3   :  { %456 = vmatmul.bf16.vlgmr.msrb.gmra.mxu0 %v251_v42 }
 0x220   :  { %v457_v45 = vpop.f32.mrf.mxu0 }
 0x221   :  { %v458_v46 = vadd.f32 %v457_v45, %v288_v44 }
 0x223   :  { %464 = vst [vmem:[#allocation8 + $0x10] sm:$0xff] %v458_v46 }
 0x225   :  { %v429_v49 = vpop.f32.mrf.mxu2  ;;  %v443_v50 = vpop.f32.mrf.mxu3 }
 0x226   :  { %v430_v51 = vadd.f32 %v429_v49, %v286_v47  ;;  %v444_v52 = vadd.f32 %v443_v50, %v287_v48 }
 0x228   :  { %462 = vst [vmem:[#allocation8] sm:$0xff] %v430_v51  ;;  %v459_v53 = vpop.f32.mrf.mxu0 }
 0x229   :  { %463 = vst [vmem:[#allocation8 + $0x8] sm:$0xff] %v444_v52  ;;  %v460_v54 = vadd.f32 %v459_v53, %v288_v44 }
 0x22b   :  { %467 = vst [vmem:[#allocation8 + $0x28] sm:$0xff] %v460_v54 }
 0x22d   :  { %v431_v55 = vpop.f32.mrf.mxu2  ;;  %v445_v56 = vpop.f32.mrf.mxu3 }
 0x22e   :  { %v432_v57 = vadd.f32 %v431_v55, %v286_v47  ;;  %v446_v58 = vadd.f32 %v445_v56, %v287_v48 }
 0x230   :  { %465 = vst [vmem:[#allocation8 + $0x18] sm:$0xff] %v432_v57 }
 0x231   :  { %466 = vst [vmem:[#allocation8 + $0x20] sm:$0xff] %v446_v58 }
 0x232   :  { %480 = dma.vmem_to_hbm [thread:$0]  %s473_s20, 768, %s475_s5, [#allocation4], %s818_s23, %s818_s23, %s819_s24  }
 0x233   :  { %806 = dma.done.wait [#allocation4], 768  }
 0x234   :  { %807 = vsyncadd [#allocation4], 4294966528 }
 0x235   :  { %485 = vsyncpa [#allocation3], 1 }
 0x236   :  { %486 = vsyncpa [#allocation6], 1 }
 0x237   :  { %487 = vsyncpa [#allocation4], 1 }

</bundles_post_ra>
